<compile_context>
chip_gen: v7x
topology: tpu7x:2x2x1
jax: 0.10.0
libtpu: 0.0.40
codegen_flags: <defaults>
</compile_context>

<pallas_src>
import jax
import jax.numpy as jnp
from jax.experimental import pallas as pl
from jax.experimental.pallas import tpu as pltpu


def _residual_mix_kernel(wp_ref, b_ref, x_ref, o_ref):
    """o[n] = wp @ x[n] + b  for every image n in this block.

    The residual (fn(x) + x) is already folded into wp = W + I by the
    wrapper, so a single MXU dot per image produces the full residual output.

    wp_ref : (C, C)      VMEM, conv-1x1 weight with identity folded in
    b_ref  : (C, 1)      VMEM, f32 bias (broadcasts over lanes)
    x_ref  : (Nb, C, T)  VMEM tile; spatial axis T on lanes (lane-dense I/O)
    o_ref  : (Nb, C, T)  VMEM tile
    """
    wp = wp_ref[...]
    b = b_ref[...]
    nb = x_ref.shape[0]

    def one_image(n):
        y = jnp.dot(wp, x_ref[n],
                    preferred_element_type=jnp.float32,
                    precision=jax.lax.Precision.HIGHEST)
        # Direct per-image store: no rows list / concatenate, so only one
        # (C, T) result is live at a time (no vreg spilling).
        o_ref[n] = (y + b).astype(o_ref.dtype)

    if nb <= 8:
        for n in range(nb):          # small static unroll
            one_image(n)
    else:
        def body(n, carry):          # large batch blocks: rolled loop
            one_image(n)
            return carry
        jax.lax.fori_loop(0, nb, body, 0)


def _tpu_info():
    """Best-effort query of per-core VMEM capacity and TensorCore count."""
    vmem_bytes = 64 * 1024 * 1024        # conservative default: v7x per-TC
    num_cores = 1
    try:
        info = pltpu.get_tpu_info()
        vmem_bytes = int(getattr(info, "vmem_capacity_bytes", vmem_bytes))
        num_cores = int(getattr(info, "num_cores", num_cores))
    except Exception:
        pass
    try:
        kind = jax.devices()[0].device_kind.lower()
        if "v7" in kind:                 # 2 TensorCores per chip
            num_cores = max(num_cores, 2)
    except Exception:
        pass
    return vmem_bytes, num_cores


def _choose_tiling(N, C, HW, itemsize, num_cores, target_tile_bytes):
    """Pick (images-per-step, spatial-tile) for an HBM-bound kernel."""
    cdiv = lambda a, b: -(-a // b)

    # Spatial tile: lane-dense, multiple of 128 (or the full HW), sized so a
    # single-image (C, tile_hw) input tile is ~target_tile_bytes.
    row_bytes = C * itemsize
    cap = max(128, (target_tile_bytes // max(row_bytes, 1)) // 128 * 128)
    tile_hw = HW if HW <= cap else cap

    # Batch blocking: if a full-HW tile is still small, process several images
    # per grid step to amortize the fixed ~0.35 us per-step overhead.
    tile_bytes = C * tile_hw * itemsize
    nb = max(1, min(N, target_tile_bytes // max(tile_bytes, 1)))

    # Megacore (v7x): guarantee >= num_cores parallel grid steps so no
    # TensorCore idles.  Gated on generation so v5e/v6e keep the big tiles.
    steps = lambda nb_, thw_: cdiv(N, nb_) * cdiv(HW, thw_)
    if num_cores > 1 and steps(nb, tile_hw) < num_cores:
        nb = max(1, nb // num_cores)
    if num_cores > 1 and steps(nb, tile_hw) < num_cores and HW > 128:
        tile_hw = max(128, ((cdiv(HW, num_cores) + 127) // 128) * 128)

    return nb, tile_hw


def residual_1x1conv(x_nchw, weight, bias, *, target_tile_bytes=2 << 20):
    """out = Conv2d_1x1(x) + x, NCHW in / NCHW out (PyTorch semantics)."""
    N, C, H, W = x_nchw.shape
    HW = H * W
    x3d = x_nchw.reshape(N, C, HW)            # free reshape of contiguous NCHW

    in_dtype = x_nchw.dtype
    itemsize = jnp.dtype(in_dtype).itemsize

    # Fold the residual into the weight: (W + I) @ x + b == W @ x + b + x.
    # Keep bf16 activations in bf16 (HBM traffic halves on v6e/v7x); the MXU
    # accumulates in f32 regardless.
    compute_dtype = jnp.float32 if in_dtype == jnp.float32 else in_dtype
    w_prime = (weight.astype(jnp.float32)
               + jnp.eye(C, dtype=jnp.float32)).astype(compute_dtype)
    b_col = bias.astype(jnp.float32).reshape(C, 1)

    vmem_capacity, num_cores = _tpu_info()
    nb, tile_hw = _choose_tiling(N, C, HW, itemsize, num_cores,
                                 target_tile_bytes)
    grid = (pl.cdiv(N, nb), pl.cdiv(HW, tile_hw))

    # Explicit scoped-VMEM budget: double-buffered in + out tiles + weights,
    # clipped under physical capacity (64 MiB/TC on v7x, 128 MiB on v5e/v6e).
    tile_bytes = nb * C * tile_hw * itemsize
    vmem_need = 4 * tile_bytes + (C * C + C) * 4 + (2 << 20)
    vmem_limit = int(min(int(0.8 * vmem_capacity), max(vmem_need, 16 << 20)))

    cost = pl.CostEstimate(
        flops=int(N * HW * C * (2 * C + 1)),
        transcendentals=0,
        bytes_accessed=int(2 * N * C * HW * itemsize + (C * C + C) * 4),
    )

    out3d = pl.pallas_call(
        _residual_mix_kernel,
        out_shape=jax.ShapeDtypeStruct((N, C, HW), in_dtype),
        grid=grid,
        in_specs=[
            # Weight / bias: tiny VMEM tiles with constant index_map — DMA'd
            # once and reused every grid step (no SMEM padding, no per-step
            # scalar-to-vreg broadcasts).
            pl.BlockSpec((C, C), lambda i, p: (0, 0)),
            pl.BlockSpec((C, 1), lambda i, p: (0, 0)),
            # Activations: nb images x full C x lane-dense spatial tile.
            pl.BlockSpec((nb, C, tile_hw), lambda i, p: (i, 0, p)),
        ],
        out_specs=pl.BlockSpec((nb, C, tile_hw), lambda i, p: (i, 0, p)),
        compiler_params=pltpu.CompilerParams(
            dimension_semantics=("parallel", "parallel"),
            vmem_limit_bytes=vmem_limit,
        ),
        cost_estimate=cost,
    )(w_prime, b_col, x3d)

    # Free reshape back to NCHW.
    return out3d.reshape(N, C, H, W)


if __name__ == "__main__":
    key = jax.random.PRNGKey(0)
    kx, kw, kb = jax.random.split(key, 3)

    N, C, H, W = 2, 4, 16, 16
    x = jax.random.normal(kx, (N, C, H, W), dtype=jnp.float32)
    weight = jax.random.normal(kw, (C, C), dtype=jnp.float32) * 0.1  # Conv2d 1x1 weight
    bias = jax.random.normal(kb, (C,), dtype=jnp.float32) * 0.1

    out = residual_1x1conv(x, weight, bias)
    out = jax.block_until_ready(out)

    # Pure-JAX reference of fn(x) + x (Conv2d 1x1 == channel einsum + bias).
    ref = jnp.einsum("oc,nchw->nohw", weight, x) + bias[None, :, None, None] + x
    assert out.shape == (N, C, H, W)
    assert jnp.allclose(out, ref, atol=1e-5, rtol=1e-5)

    print("KERNEL_OK")
</pallas_src>

<mosaic_0001>
module attributes {stable_mosaic.version = 11 : i64} {
  func.func @_residual_mix_kernel(%arg0: i32, %arg1: i32, %arg2: memref<4x4xf32, #tpu.memory_space<vmem>>, %arg3: memref<4x1xf32, #tpu.memory_space<vmem>>, %arg4: memref<2x4x256xf32, #tpu.memory_space<vmem>>, %arg5: memref<2x4x256xf32, #tpu.memory_space<vmem>>) attributes {dimension_semantics = [#tpu.dimension_semantics<parallel>, #tpu.dimension_semantics<parallel>], iteration_bounds = array<i64: 1, 1>, scalar_prefetch = 0 : i64, scratch_operands = 0 : i64, tpu.core_type = #tpu.core_type<tc>, window_params = [{pipeline_mode = #tpu.pipeline_mode<synchronous>, transform_indices = @transform_0, window_bounds = array<i64: 4, 4>}, {pipeline_mode = #tpu.pipeline_mode<synchronous>, transform_indices = @transform_1, window_bounds = array<i64: 4, 1>}, {transform_indices = @transform_2, window_bounds = array<i64: 2, 4, 256>}, {transform_indices = @transform_3, window_bounds = array<i64: 2, 4, 256>}]} {
    %c0 = arith.constant 0 : index
    %c0_0 = arith.constant 0 : index
    %0 = vector.load %arg2[%c0, %c0_0] : memref<4x4xf32, #tpu.memory_space<vmem>>, vector<4x4xf32>
    %c0_1 = arith.constant 0 : index
    %c0_2 = arith.constant 0 : index
    %1 = vector.load %arg3[%c0_1, %c0_2] : memref<4x1xf32, #tpu.memory_space<vmem>>, vector<4x1xf32>
    %c0_3 = arith.constant 0 : index
    %c0_4 = arith.constant 0 : index
    %c0_5 = arith.constant 0 : index
    %2 = vector.load %arg4[%c0_3, %c0_4, %c0_5] : memref<2x4x256xf32, #tpu.memory_space<vmem>>, vector<1x4x256xf32>
    %3 = vector.shape_cast %2 : vector<1x4x256xf32> to vector<4x256xf32>
    %cst = arith.constant dense<0.000000e+00> : vector<4x256xf32>
    %4 = tpu.matmul %0, %3, %cst {dimension_numbers = #tpu.dot_dimension_numbers<[1], [0], [0], [1], [0, 0, 1, 1], [], []>, precision = #tpu.contract_precision<fp32>} : vector<4x4xf32>, vector<4x256xf32>, vector<4x256xf32> -> vector<4x256xf32>
    %5 = vector.broadcast %1 : vector<4x1xf32> to vector<4x256xf32>
    %6 = arith.addf %4, %5 : vector<4x256xf32>
    %c0_6 = arith.constant 0 : index
    %c0_7 = arith.constant 0 : index
    %c0_8 = arith.constant 0 : index
    %7 = vector.load %arg5[%c0_6, %c0_7, %c0_8] : memref<2x4x256xf32, #tpu.memory_space<vmem>>, vector<1x4x256xf32>
    %8 = vector.shape_cast %7 : vector<1x4x256xf32> to vector<4x256xf32>
    %9 = vector.shape_cast %6 : vector<4x256xf32> to vector<1x4x256xf32>
    tpu.vector_store %arg5[%c0_6, %c0_7, %c0_8], %9 {strides = array<i32>} : memref<2x4x256xf32, #tpu.memory_space<vmem>>, vector<1x4x256xf32>,
    %c1 = arith.constant 1 : index
    %c0_9 = arith.constant 0 : index
    %c0_10 = arith.constant 0 : index
    %10 = vector.load %arg4[%c1, %c0_9, %c0_10] : memref<2x4x256xf32, #tpu.memory_space<vmem>>, vector<1x4x256xf32>
    %11 = vector.shape_cast %10 : vector<1x4x256xf32> to vector<4x256xf32>
    %cst_11 = arith.constant dense<0.000000e+00> : vector<4x256xf32>
    %12 = tpu.matmul %0, %11, %cst_11 {dimension_numbers = #tpu.dot_dimension_numbers<[1], [0], [0], [1], [0, 0, 1, 1], [], []>, precision = #tpu.contract_precision<fp32>} : vector<4x4xf32>, vector<4x256xf32>, vector<4x256xf32> -> vector<4x256xf32>
    %13 = vector.broadcast %1 : vector<4x1xf32> to vector<4x256xf32>
    %14 = arith.addf %12, %13 : vector<4x256xf32>
    %c1_12 = arith.constant 1 : index
    %c0_13 = arith.constant 0 : index
    %c0_14 = arith.constant 0 : index
    %15 = vector.load %arg5[%c1_12, %c0_13, %c0_14] : memref<2x4x256xf32, #tpu.memory_space<vmem>>, vector<1x4x256xf32>
    %16 = vector.shape_cast %15 : vector<1x4x256xf32> to vector<4x256xf32>
    %17 = vector.shape_cast %14 : vector<4x256xf32> to vector<1x4x256xf32>
    tpu.vector_store %arg5[%c1_12, %c0_13, %c0_14], %17 {strides = array<i32>} : memref<2x4x256xf32, #tpu.memory_space<vmem>>, vector<1x4x256xf32>,
    return
  }
  func.func @transform_0(%arg0: i32, %arg1: i32) -> (i32, i32) {
    %c0_i32 = arith.constant 0 : i32
    %c0_i32_0 = arith.constant 0 : i32
    %c0_i32_1 = arith.constant 0 : i32
    return %c0_i32, %c0_i32_0 : i32, i32
  }
  func.func @transform_1(%arg0: i32, %arg1: i32) -> (i32, i32) {
    %c0_i32 = arith.constant 0 : i32
    %c0_i32_0 = arith.constant 0 : i32
    %c0_i32_1 = arith.constant 0 : i32
    return %c0_i32, %c0_i32_0 : i32, i32
  }
  func.func @transform_2(%arg0: i32, %arg1: i32) -> (i32, i32, i32) {
    %c0_i32 = arith.constant 0 : i32
    %c0_i32_0 = arith.constant 0 : i32
    return %arg0, %c0_i32, %arg1 : i32, i32, i32
  }
  func.func @transform_3(%arg0: i32, %arg1: i32) -> (i32, i32, i32) {
    %c0_i32 = arith.constant 0 : i32
    %c0_i32_0 = arith.constant 0 : i32
    return %arg0, %c0_i32, %arg1 : i32, i32, i32
  }
}

</mosaic_0001>

<bundles_post_ra>
// kernel: tpu_custom_call.1
= control target key start
LH: loop header
LB: loop body
LE: loop exit
PB: predicated region body
PF: predicated region fallthrough
CT: control target
= control target key end

     0   :  { %8 = vsyncpa [#allocation3], 0  ;;  %s1190_s0 = inlined_call_operand.vmem [shape: f32[4,4], index: 0, kind: input, shape index: {}]   ;;  %s1191_s1 = inlined_call_operand.vmem [shape: f32[4,1], index: 1, kind: input, shape index: {}]   ;;  %s1192_s2 = inlined_call_operand.hbm [shape: f32[2,4,256], index: 2, kind: input, shape index: {}]   ;;  %s1193_s3 = inlined_call_operand.hbm [shape: f32[2,4,256], index: 3, kind: output, shape index: {}]  }
   0x1   :  { %9 = vsyncpa [#allocation4], 0  ;;  %s1095_s12 = smov [#allocation2]   ;;  %s1047_s16 = scalar_lea.hbm %s1192_s2, 256 }
   0x2   :  { %s19_s13 = sshll.u32 %s1095_s12, 4  ;;  %p1048_p0 = scmp.ne.s32.totalorder %s1192_s2, %s1047_s16  ;;  %s20_s13 = int_to_ptr.vmem [resolvable:$true] %s19_s13 }
   0x3   :  { %p1051_p1 = scmp.lt.u32.totalorder %s1047_s16, %s1192_s2 }
   0x5   :  { %p1053_p2 = pnand %p1051_p1, %p1048_p0 }
   0x7   :  { %1056 = shalt.err (!%p1053_p2)
}
   0x8   :  { %s1057_s21 = scalar_lea.vmem %s20_s13, 256  ;;  %p1062_p4 = scmp.lt.s32.totalorder %s20_s13, %s20_s13 }
   0x9   :  { %p1058_p3 = scmp.ne.s32.totalorder %s20_s13, %s1057_s21  ;;  %p1063_p5 = scmp.lt.s32.totalorder %s1057_s21, %s1057_s21 }
   0xb   :  { %p1064_p6 = por %p1063_p5, %p1062_p4 }
   0xd   :  { %p1065_p7 = pnand %p1064_p6, %p1058_p3 }
   0xf   :  { %1068 = shalt.err (!%p1065_p7)
}
  0x10   :  { %s1096_s22 = smov 128   ;;  %s1097_s23 = smov 8  }
  0x11   :  { %25 = dma.hbm_to_vmem [thread:$0]  %s1192_s2, 256, %s20_s13, [#allocation3], %s1096_s22, %s1096_s22, %s1097_s23  }
  0x12   :  { %1091 = dma.done.wait [#allocation3], 256  }
  0x13   :  { %1092 = vsyncadd [#allocation3], 4294967040  ;;  %v1098_v0 = vmov 0.0   ;;  %v1099_v1 = vmov 0   ;;  %vm43_vm0 = vcmask 1043456   ;;  %vm39_vm1 = vcmask 31744  }
  0x14   :  { %114 = vmatprep.mubr.f32.mxu0 %v1098_v0  ;;  %592 = vmatprep.mubr.f32.mxu1 %v1098_v0  ;;  %v31_v2 = vld [vmem:[#allocation2] sm:$0xff]  ;;  %v519_v3 = vld [vmem:[#allocation2 + $0x8] sm:$0xff] }
  0x15   :  { %1044 = vset.pattern.permute.xlu0 %v1099_v1  ;;  %v29_v4 = vld [vmem:[%s1190_s0] sm:$0xf]  ;;  %v38_v5 = vcombine.high %v31_v2, %v31_v2  ;;  %v521_v6 = vcombine.high %v519_v3, %v519_v3  ;;  %v44_v7 = vsel %vm43_vm0, %v31_v2, 0  ;;  %v522_v8 = vsel %vm43_vm0, %v519_v3, 0  ;;  %s1100_s0 = smov [#allocation5]  }
  0x16   :  { %v30_v9 = vld [vmem:[%s1191_s1] sm:$0xf]  ;;  %v1144_v10 = vand.u32 4294901760, %v44_v7  ;;  %v1146_v11 = vand.u32 4294901760, %v522_v8  ;;  %v41_v12 = vsel %vm39_vm1, %v29_v4, 0  ;;  %s1002_s1 = sshll.u32 %s1100_s0, 4  ;;  %s1003_s1 = int_to_ptr.vmem [resolvable:$true] %s1002_s1 }
  0x17   :  { %34 = vperm.xlu0 %1044, %v30_v9   ;;  %v46_v13 = vsel %vm43_vm0, %v38_v5, 0  ;;  %v524_v14 = vsel %vm43_vm0, %v521_v6, 0  ;;  %v1148_v15 = vand.u32 4294901760, %v41_v12  ;;  %s1069_s29 = scalar_lea.vmem %s1003_s1, 256  ;;  %p1074_p9 = scmp.lt.s32.totalorder %s1003_s1, %s1003_s1 }
  0x18   :  { %v48_v16 = vand.u32 4294901760, %v46_v13  ;;  %v526_v17 = vand.u32 4294901760, %v524_v14  ;;  %v133_v18 = vsub.f32 %v44_v7, %v1144_v10  ;;  %v611_v19 = vsub.f32 %v522_v8, %v1146_v11  ;;  %p1070_p8 = scmp.ne.s32.totalorder %s1003_s1, %s1069_s29  ;;  %p1075_p10 = scmp.lt.s32.totalorder %s1069_s29, %s1069_s29 }
  0x19   :  { %v116_v20 = vsub.f32 %v41_v12, %v1148_v15 }
  0x1a   :  { %49 = vmatprep.subr.mxu0 %v48_v16  ;;  %527 = vmatprep.subr.mxu1 %v526_v17  ;;  %v127_v21 = vsub.f32 %v46_v13, %v48_v16  ;;  %v605_v22 = vsub.f32 %v524_v14, %v526_v17  ;;  %v134_v23 = vand.u32 4294901760, %v133_v18  ;;  %v612_v24 = vand.u32 4294901760, %v611_v19  ;;  %p1076_p11 = por %p1075_p10, %p1074_p9 }
  0x1b   :  { %51 = vmatpush1.msra.mxu0 %v1144_v10  ;;  %529 = vmatpush1.msra.mxu1 %v1146_v11  ;;  %v117_v25 = vand.u32 4294901760, %v116_v20 }
  0x1c   :  { %v128_v26 = vand.u32 4294901760, %v127_v21  ;;  %v606_v27 = vand.u32 4294901760, %v605_v22  ;;  %v135_v28 = vsub.f32 %v133_v18, %v134_v23  ;;  %v613_v29 = vsub.f32 %v611_v19, %v612_v24  ;;  %p1077_p12 = pnand %p1076_p11, %p1070_p8 }
  0x1d   :  { %v118_v30 = vsub.f32 %v116_v20, %v117_v25 }
  0x1e   :  { %v129_v31 = vsub.f32 %v127_v21, %v128_v26  ;;  %v607_v32 = vsub.f32 %v605_v22, %v606_v27  ;;  %v136_v34 = vand.u32 4294901760, %v135_v28  ;;  %v614_v35 = vand.u32 4294901760, %v613_v29 }
  0x1f   :  { %v119_v33 = vand.u32 4294901760, %v118_v30 }
  0x20   :  { %v130_v36 = vand.u32 4294901760, %v129_v31  ;;  %v608_v37 = vand.u32 4294901760, %v607_v32 }
  0x21   :  { %120 = vmatmul.mubr.f32.vlgmr.msra.gmra.mrb[0].mxu0 %v119_v33  ;;  %598 = vmatmul.mubr.f32.vlgmr.msra.gmra.mrb[0].mxu1 %v119_v33 }
  0x22   :  { %131 = vmatprep.subr.mxu0 %v130_v36  ;;  %609 = vmatprep.subr.mxu1 %v608_v37 }
  0x23   :  { %137 = vmatpush1.msra.mxu0 %v136_v34  ;;  %615 = vmatpush1.msra.mxu1 %v614_v35 }
  0x24   :  { %200 = vmatprep.mubr.f32.mxu0 %v1098_v0  ;;  %678 = vmatprep.mubr.f32.mxu1 %v1098_v0 }
  0x25   :  { %210 = vmatprep.subr.mxu0 %v127_v21  ;;  %688 = vmatprep.subr.mxu1 %v605_v22 }
  0x29   :  { %202 = vmatmul.mubr.f32.vlgmr.msra.gmra.mrb[0].mxu0 %v1148_v15  ;;  %680 = vmatmul.mubr.f32.vlgmr.msra.gmra.mrb[0].mxu1 %v1148_v15 }
  0x2a   :  { %213 = vmatpush1.msra.mxu0 %v133_v18  ;;  %691 = vmatpush1.msra.mxu1 %v611_v19 }
  0x2b   :  { %276 = vmatprep.mubr.f32.mxu0 %v1098_v0  ;;  %754 = vmatprep.mubr.f32.mxu1 %v1098_v0 }
  0x2c   :  { %286 = vmatprep.subr.mxu0 %v48_v16  ;;  %764 = vmatprep.subr.mxu1 %v526_v17 }
  0x31   :  { %279 = vmatmul.mubr.f32.vlgmr.msra.gmra.mrb[0].mxu0 %v116_v20  ;;  %757 = vmatmul.mubr.f32.vlgmr.msra.gmra.mrb[0].mxu1 %v116_v20 }
  0x32   :  { %288 = vmatpush1.msra.mxu0 %v1144_v10  ;;  %766 = vmatpush1.msra.mxu1 %v1146_v11 }
  0x33   :  { %351 = vmatprep.mubr.f32.mxu0 %v1098_v0  ;;  %829 = vmatprep.mubr.f32.mxu1 %v1098_v0 }
  0x34   :  { %364 = vmatprep.subr.mxu0 %v128_v26  ;;  %842 = vmatprep.subr.mxu1 %v606_v27 }
  0x39   :  { %355 = vmatmul.mubr.f32.vlgmr.msra.gmra.mrb[0].mxu0 %v117_v25  ;;  %833 = vmatmul.mubr.f32.vlgmr.msra.gmra.mrb[0].mxu1 %v117_v25 }
  0x3a   :  { %368 = vmatpush1.msra.mxu0 %v134_v23  ;;  %846 = vmatpush1.msra.mxu1 %v612_v24 }
  0x3b   :  { %431 = vmatprep.mubr.f32.mxu0 %v1098_v0  ;;  %909 = vmatprep.mubr.f32.mxu1 %v1098_v0 }
  0x3c   :  { %440 = vmatprep.subr.mxu0 %v48_v16  ;;  %918 = vmatprep.subr.mxu1 %v526_v17 }
  0x41   :  { %433 = vmatmul.mubr.f32.vlgmr.msra.gmra.mrb[0].mxu0 %v1148_v15  ;;  %911 = vmatmul.mubr.f32.vlgmr.msra.gmra.mrb[0].mxu1 %v1148_v15 }
  0x42   :  { %442 = vmatpush1.msra.mxu0 %v1144_v10  ;;  %920 = vmatpush1.msra.mxu1 %v1146_v11 }
  0x43   :  { %505 = vmatprep.mubr.f32.mxu0 %v1098_v0  ;;  %983 = vmatprep.mubr.f32.mxu1 %v1098_v0 }
  0x49   :  { %507 = vmatmul.mubr.f32.vlgmr.msra.gmra.mrb[0].mxu0 %v1148_v15  ;;  %985 = vmatmul.mubr.f32.vlgmr.msra.gmra.mrb[0].mxu1 %v1148_v15 }
  0x96   :  { %v35_v38 = vpop.permute.xlu0 %34 }
 0x11c   :  { %v508_v39 = vpop.f32.mrb[0].mxu0  ;;  %v986_v40 = vpop.f32.mrb[0].mxu1 }
 0x11d   :  { %v1014_v41 = vadd.f32 %v508_v39, %v35_v38  ;;  %v1016_v42 = vadd.f32 %v986_v40, %v35_v38  ;;  %v510_v43 = vpop.f32.mrb[1].mxu0  ;;  %v988_v44 = vpop.f32.mrb[1].mxu1 }
 0x11e   :  { %v1015_v45 = vadd.f32 %v510_v43, %v35_v38  ;;  %v1017_v46 = vadd.f32 %v988_v44, %v35_v38 }
 0x120   :  { %v515_v47 = vcombine.low %v1014_v41, %v1015_v45  ;;  %v993_v48 = vcombine.low %v1016_v42, %v1017_v46 }
 0x122   :  { %517 = vst [vmem:[#allocation5] sm:$0xff] %v515_v47  ;;  %996 = vst [vmem:[#allocation5 + $0x8] sm:$0xff] %v993_v48 }
 0x123   :  { %1080 = shalt.err (!%p1077_p12)
}
 0x124   :  { %s1081_s5 = scalar_lea.hbm %s1193_s3, 256 }
 0x125   :  { %p1082_p13 = scmp.ne.s32.totalorder %s1193_s3, %s1081_s5  ;;  %p1085_p0 = scmp.lt.u32.totalorder %s1081_s5, %s1193_s3 }
 0x127   :  { %p1087_p1 = pnand %p1085_p0, %p1082_p13 }
 0x129   :  { %1090 = shalt.err (!%p1087_p1)
}
 0x12a   :  { %1008 = dma.vmem_to_hbm [thread:$0]  %s1003_s1, 256, %s1193_s3, [#allocation4], %s1096_s22, %s1096_s22, %s1097_s23  }
 0x12b   :  { %1093 = dma.done.wait [#allocation4], 256  }
 0x12c   :  { %1094 = vsyncadd [#allocation4], 4294967040 }
 0x12d   :  { %1012 = vsyncpa [#allocation3], 1 }
 0x12e   :  { %1013 = vsyncpa [#allocation4], 1 }

</bundles_post_ra>
